<compile_context>
chip_gen: v5e
topology: v5e:2x2
jax: 0.10.0
libtpu: 0.0.40
codegen_flags: <defaults>
</compile_context>

<pallas_src>
import functools

import jax
import jax.numpy as jnp
from jax import lax
from jax.experimental import pallas as pl
from jax.experimental.pallas import tpu as pltpu

LANES = 128
SUBLANES = 8
INNER_CHUNK_ROWS = 256   # fori_loop sub-chunk: (256,128) f32 temps = 128 KiB


def _chip_config():
    """Generation-aware tiling knobs.

    v7x: 2 TensorCores but only 64 MiB VMEM/TC -> 4 MiB input blocks,
         2-way core split, VMEM limit modestly above the 32 MiB default.
    v5e/v6e: single TC, 128 MiB VMEM -> 8 MiB input blocks, no core split.
    Unknown chip / detection failure: conservative, safe-everywhere settings.
    """
    kind = ""
    try:
        kind = jax.devices()[0].device_kind.lower()
    except Exception:
        pass
    if "7" in kind:                                   # v7x
        return dict(num_core_splits=2,
                    block_bytes=4 * 1024 * 1024,
                    vmem_limit_bytes=40 * 1024 * 1024)
    if ("v5" in kind) or ("v6" in kind):              # v5e / v5p / v6e
        return dict(num_core_splits=1,
                    block_bytes=8 * 1024 * 1024,
                    vmem_limit_bytes=64 * 1024 * 1024)
    return dict(num_core_splits=1,                    # unknown: conservative
                block_bytes=4 * 1024 * 1024,
                vmem_limit_bytes=32 * 1024 * 1024)


def _huber_block_kernel(pred_ref, true_ref, out_ref, *, delta, block_rows,
                        chunk_rows, steps, rows_total, needs_mask):
    """Accumulate per-(sublane, lane) partial Huber-loss sums into out_ref.

    out_ref is an (8,128) f32 block resident in VMEM across the reduction
    ("arbitrary") grid axis; the cross-lane reduce happens once in the wrapper.
    The block is processed in (chunk_rows,128) sub-chunks inside a fori_loop so
    intermediates stay a few dozen vregs instead of a multi-MiB VMEM temp.
    """
    s = pl.program_id(1)

    @pl.when(s == 0)
    def _():
        out_ref[...] = jnp.zeros_like(out_ref)

    half_delta_sq = 0.5 * delta * delta
    if needs_mask:
        g = pl.program_id(0) * steps + s          # global block index (unclamped)
        row0 = g * block_rows                     # first logical row of this block
        iota = lax.broadcasted_iota(jnp.int32, (chunk_rows, 1), 0)

    def body(i, acc):
        r0 = pl.multiple_of(i * chunk_rows, chunk_rows)
        p = pred_ref[pl.ds(r0, chunk_rows), :].astype(jnp.float32)
        t = true_ref[pl.ds(r0, chunk_rows), :].astype(jnp.float32)
        err = t - p
        abs_err = jnp.abs(err)
        sq = 0.5 * (err * err)
        if delta == 1.0:                          # constant-folded (v5e VALU)
            lin = abs_err - 0.5
        else:
            lin = delta * abs_err - half_delta_sq
        loss = jnp.where(abs_err < delta, sq, lin)
        if needs_mask:
            rows = row0 + r0 + iota               # global row ids, (chunk_rows,1)
            loss = jnp.where(rows < rows_total, loss, 0.0)
        # (chunk,128) -> (chunk/8, 8, 128) -> sum leading axis: plain vreg adds.
        return acc + jnp.sum(
            loss.reshape(chunk_rows // SUBLANES, SUBLANES, LANES), axis=0)

    n_chunks = block_rows // chunk_rows
    acc = lax.fori_loop(0, n_chunks, body,
                        jnp.zeros((SUBLANES, LANES), jnp.float32),
                        unroll=min(4, n_chunks))
    out_ref[...] += acc


def _huber_elementwise_sum(pred, true, delta):
    err = true.astype(jnp.float32) - pred.astype(jnp.float32)
    abs_err = jnp.abs(err)
    sq = 0.5 * err * err
    lin = delta * abs_err - 0.5 * delta * delta
    return jnp.sum(jnp.where(abs_err < delta, sq, lin))


def huber_loss(y_pred, y_true, delta: float = 1.0):
    assert y_pred.shape == y_true.shape
    delta = float(delta)
    total = y_pred.size
    if total == 0:
        return jnp.asarray(jnp.nan, dtype=jnp.float32)
    inv_total = 1.0 / float(total)

    cfg = _chip_config()

    flat_pred = jnp.ravel(y_pred)
    flat_true = jnp.ravel(y_true)

    rows_total = total // LANES
    if rows_total < SUBLANES:
        # Tiny input (< 1024 elements): not worth a kernel launch.
        return _huber_elementwise_sum(flat_pred, flat_true, delta) * inv_total

    lead = rows_total * LANES
    if lead == total:
        # Free reshape (pure metadata) — no HBM copy before the kernel.
        pred2d = flat_pred.reshape(rows_total, LANES)
        true2d = flat_true.reshape(rows_total, LANES)
    else:
        # total not a multiple of 128: XLA materializes the sliced prefix
        # (one extra read+write). Only hits non-lane-aligned shapes; typical
        # loss tensors are 128-aligned.  The <128-element remainder goes to
        # the tiny JAX epilogue below.
        pred2d = flat_pred[:lead].reshape(rows_total, LANES)
        true2d = flat_true[:lead].reshape(rows_total, LANES)

    # Byte-based, dtype-aware block size (e.g. 8192 f32 rows / 16384 bf16 rows
    # at 4 MiB; double that on v5e/v6e).
    itemsize = max(jnp.dtype(pred2d.dtype).itemsize,
                   jnp.dtype(true2d.dtype).itemsize)
    cap_rows = cfg["block_bytes"] // (LANES * itemsize)
    cap_rows = max(SUBLANES, (cap_rows // SUBLANES) * SUBLANES)

    block_rows = min(cap_rows, (rows_total // SUBLANES) * SUBLANES)
    chunk_rows = min(INNER_CHUNK_ROWS, block_rows)
    block_rows = (block_rows // chunk_rows) * chunk_rows   # multiple of chunk

    nblocks = pl.cdiv(rows_total, block_rows)
    num_cores = cfg["num_core_splits"] if nblocks >= 2 else 1
    steps = pl.cdiv(nblocks, num_cores)
    padded_rows = num_cores * steps * block_rows
    needs_mask = padded_rows != rows_total

    last_block = nblocks - 1
    if num_cores * steps == nblocks:
        in_map = lambda c, s: (c * steps + s, 0)
    else:
        # Padded grid steps re-read the last valid block; their contribution
        # is fully masked out in-kernel.
        in_map = lambda c, s: (jnp.minimum(c * steps + s, last_block), 0)

    kernel = functools.partial(
        _huber_block_kernel, delta=delta, block_rows=block_rows,
        chunk_rows=chunk_rows, steps=steps, rows_total=rows_total,
        needs_mask=needs_mask)

    partials = pl.pallas_call(
        kernel,
        out_shape=jax.ShapeDtypeStruct((num_cores * SUBLANES, LANES),
                                       jnp.float32),
        grid_spec=pltpu.PrefetchScalarGridSpec(
            num_scalar_prefetch=0,
            grid=(num_cores, steps),
            in_specs=[
                pl.BlockSpec((block_rows, LANES), in_map),
                pl.BlockSpec((block_rows, LANES), in_map),
            ],
            out_specs=pl.BlockSpec((SUBLANES, LANES), lambda c, s: (c, 0)),
        ),
        compiler_params=pltpu.CompilerParams(
            dimension_semantics=("parallel", "arbitrary"),
            vmem_limit_bytes=cfg["vmem_limit_bytes"],
        ),
    )(pred2d, true2d)

    loss_sum = jnp.sum(partials)

    if lead < total:
        # Sub-128-element remainder only.
        loss_sum = loss_sum + _huber_elementwise_sum(
            flat_pred[lead:], flat_true[lead:], delta)

    return loss_sum * inv_total


def huber_loss_ref(y_pred, y_true, delta: float = 1.0):
    err = y_true.astype(jnp.float32) - y_pred.astype(jnp.float32)
    abs_err = jnp.abs(err)
    sq = jnp.square(err) / 2.0
    lin = delta * (abs_err - delta / 2.0)
    return jnp.mean(jnp.where(abs_err < delta, sq, lin))


if __name__ == "__main__":
    key = jax.random.PRNGKey(0)
    k1, k2 = jax.random.split(key)

    # Small NCHW-like regression target: (B, C, H, W) = (2, 4, 16, 16).
    shape = (2, 4, 16, 16)
    y_pred = jax.random.normal(k1, shape, dtype=jnp.float32)
    y_true = jax.random.normal(k2, shape, dtype=jnp.float32) * 2.0

    fn = jax.jit(functools.partial(huber_loss, delta=1.0))
    out = jax.block_until_ready(fn(y_pred, y_true))

    ref = huber_loss_ref(y_pred, y_true, delta=1.0)
    assert jnp.allclose(out, ref, rtol=1e-5, atol=1e-5), (out, ref)

    print("KERNEL_OK")
</pallas_src>

<mosaic_0001>
module attributes {stable_mosaic.version = 11 : i64} {
  func.func @_huber_block_kernel(%arg0: i32, %arg1: i32, %arg2: memref<16x128xf32, #tpu.memory_space<vmem>>, %arg3: memref<16x128xf32, #tpu.memory_space<vmem>>, %arg4: memref<8x128xf32, #tpu.memory_space<vmem>>) attributes {dimension_semantics = [#tpu.dimension_semantics<parallel>, #tpu.dimension_semantics<arbitrary>], iteration_bounds = array<i64: 1, 1>, scalar_prefetch = 0 : i64, scratch_operands = 0 : i64, tpu.core_type = #tpu.core_type<tc>, window_params = [{transform_indices = @transform_0, window_bounds = array<i64: 16, 128>}, {transform_indices = @transform_1, window_bounds = array<i64: 16, 128>}, {transform_indices = @transform_2, window_bounds = array<i64: 8, 128>}]} {
    %c0_i32 = arith.constant 0 : i32
    %0 = arith.cmpi eq, %arg1, %c0_i32 : i32
    %1 = arith.extui %0 : i1 to i32
    %c0_i32_0 = arith.constant 0 : i32
    %2 = arith.cmpi ne, %1, %c0_i32_0 : i32
    scf.if %2 {
      %cst_11 = arith.constant 0.000000e+00 : f32
      %26 = vector.broadcast %cst_11 : f32 to vector<8x128xf32>
      %c0_12 = arith.constant 0 : index
      %c0_13 = arith.constant 0 : index
      %27 = vector.load %arg4[%c0_12, %c0_13] : memref<8x128xf32, #tpu.memory_space<vmem>>, vector<8x128xf32>
      tpu.vector_store %arg4[%c0_12, %c0_13], %26 {strides = array<i32>} : memref<8x128xf32, #tpu.memory_space<vmem>>, vector<8x128xf32>,
    } else {
    }
    %cst = arith.constant 0.000000e+00 : f32
    %3 = vector.broadcast %cst : f32 to vector<8x128xf32>
    %c0_i32_1 = arith.constant 0 : i32
    %c16_i32 = arith.constant 16 : i32
    %4 = arith.muli %c0_i32_1, %c16_i32 : i32
    %5 = tpu.assume_multiple %4, 16 : i32
    %6 = arith.index_cast %5 : i32 to index
    %c0 = arith.constant 0 : index
    %7 = vector.load %arg2[%6, %c0] : memref<16x128xf32, #tpu.memory_space<vmem>>, vector<16x128xf32>
    %8 = arith.index_cast %5 : i32 to index
    %c0_2 = arith.constant 0 : index
    %9 = vector.load %arg3[%8, %c0_2] : memref<16x128xf32, #tpu.memory_space<vmem>>, vector<16x128xf32>
    %10 = arith.subf %9, %7 : vector<16x128xf32>
    %11 = math.absf %10 : vector<16x128xf32>
    %12 = arith.mulf %10, %10 : vector<16x128xf32>
    %cst_3 = arith.constant 5.000000e-01 : f32
    %13 = vector.broadcast %cst_3 : f32 to vector<16x128xf32>
    %14 = arith.mulf %13, %12 : vector<16x128xf32>
    %cst_4 = arith.constant 5.000000e-01 : f32
    %15 = vector.broadcast %cst_4 : f32 to vector<16x128xf32>
    %16 = arith.subf %11, %15 : vector<16x128xf32>
    %cst_5 = arith.constant 1.000000e+00 : f32
    %17 = vector.broadcast %cst_5 : f32 to vector<16x128xf32>
    %18 = arith.cmpf olt, %11, %17 : vector<16x128xf32>
    %19 = arith.select %18, %14, %16 : vector<16x128xi1>, vector<16x128xf32>
    %20 = vector.shape_cast %19 : vector<16x128xf32> to vector<2x8x128xf32>
    %cst_6 = arith.constant dense<0.000000e+00> : vector<8x128xf32>
    %21 = vector.multi_reduction <add>, %20, %cst_6 [0] : vector<2x8x128xf32> to vector<8x128xf32>
    %22 = arith.addf %3, %21 : vector<8x128xf32>
    %c1_i32 = arith.constant 1 : i32
    %c0_7 = arith.constant 0 : index
    %c0_8 = arith.constant 0 : index
    %23 = vector.load %arg4[%c0_7, %c0_8] : memref<8x128xf32, #tpu.memory_space<vmem>>, vector<8x128xf32>
    %24 = arith.addf %23, %22 : vector<8x128xf32>
    %c0_9 = arith.constant 0 : index
    %c0_10 = arith.constant 0 : index
    %25 = vector.load %arg4[%c0_9, %c0_10] : memref<8x128xf32, #tpu.memory_space<vmem>>, vector<8x128xf32>
    tpu.vector_store %arg4[%c0_9, %c0_10], %24 {strides = array<i32>} : memref<8x128xf32, #tpu.memory_space<vmem>>, vector<8x128xf32>,
    return
  }
  func.func @transform_0(%arg0: i32, %arg1: i32) -> (i32, i32) {
    %c1_i32 = arith.constant 1 : i32
    %0 = arith.muli %arg0, %c1_i32 : i32
    %1 = arith.addi %0, %arg1 : i32
    %c0_i32 = arith.constant 0 : i32
    %c0_i32_0 = arith.constant 0 : i32
    return %1, %c0_i32 : i32, i32
  }
  func.func @transform_1(%arg0: i32, %arg1: i32) -> (i32, i32) {
    %c1_i32 = arith.constant 1 : i32
    %0 = arith.muli %arg0, %c1_i32 : i32
    %1 = arith.addi %0, %arg1 : i32
    %c0_i32 = arith.constant 0 : i32
    %c0_i32_0 = arith.constant 0 : i32
    return %1, %c0_i32 : i32, i32
  }
  func.func @transform_2(%arg0: i32, %arg1: i32) -> (i32, i32) {
    %c0_i32 = arith.constant 0 : i32
    %c0_i32_0 = arith.constant 0 : i32
    return %arg0, %c0_i32 : i32, i32
  }
}

</mosaic_0001>

<bundles_post_ra>
// kernel: huber_loss.1
= control target key start
LH: loop header
LB: loop body
LE: loop exit
PB: predicated region body
PF: predicated region fallthrough
CT: control target
= control target key end

     0   :  { %s132_s0 = inlined_call_operand.vmem [shape: f32[16,128], index: 0, kind: input, shape index: {}]   ;;  %s133_s1 = inlined_call_operand.vmem [shape: f32[16,128], index: 1, kind: input, shape index: {}]   ;;  %s134_s2 = inlined_call_operand.vmem [shape: f32[8,128], index: 2, kind: output, shape index: {}]  }
   0x1   :  { %v60_v0 = vld [vmem:[%s132_s0] sm:$0xff]  ;;  %v61_v1 = vld [vmem:[%s132_s0 + $0x8] sm:$0xff] }
   0x2   :  { %v62_v2 = vld [vmem:[%s133_s1] sm:$0xff]  ;;  %v63_v3 = vld [vmem:[%s133_s1 + $0x8] sm:$0xff] }
   0x3   :  { %v64_v4 = vsub.f32 %v62_v2, %v60_v0  ;;  %v65_v5 = vsub.f32 %v63_v3, %v61_v1 }
   0x5   :  { %v66_v6 = vand.u32 2147483647, %v64_v4  ;;  %v68_v7 = vmul.f32 %v64_v4, %v64_v4  ;;  %v67_v8 = vand.u32 2147483647, %v65_v5  ;;  %v69_v9 = vmul.f32 %v65_v5, %v65_v5 }
   0x7   :  { %v70_v10 = vmul.f32 0.5, %v68_v7  ;;  %v99_v11 = vadd.f32 -0.5, %v66_v6  ;;  %vm74_vm0 = vcmp.lt.f32.partialorder %v66_v6, 1.0  ;;  %v71_v12 = vmul.f32 0.5, %v69_v9 }
   0x8   :  { %v100_v13 = vadd.f32 -0.5, %v67_v8  ;;  %vm75_vm1 = vcmp.lt.f32.partialorder %v67_v8, 1.0 }
   0x9   :  { %v76_v14 = vsel %vm74_vm0, %v70_v10, %v99_v11 }
   0xa   :  { %v77_v15 = vsel %vm75_vm1, %v71_v12, %v100_v13 }
   0xb   :  { %v78_v16 = vadd.f32 %v77_v15, %v76_v14 }
   0xd   :  { %82 = vst [vmem:[%s134_s2] sm:$0xff] %v78_v16 }

</bundles_post_ra>
